<compile_context>
chip_gen: v7x
topology: tpu7x:2x2x1
jax: 0.10.0
libtpu: 0.0.40
codegen_flags: <defaults>
</compile_context>

<pallas_src>
from functools import partial

import jax
import jax.numpy as jnp
from jax import lax
from jax.experimental import pallas as pl
from jax.experimental.pallas import tpu as pltpu


def _round_up(x: int, m: int) -> int:
    return ((x + m - 1) // m) * m


# ----------------------------------------------------------------------------
# Kernel
# ----------------------------------------------------------------------------
def _patch_embed_ln_kernel(x_ref, w_ref, bgb_ref, o_ref, *,
                           d_true: int, d_pad: int, eps: float):
    """One grid step: (tm, K) bf16 patch rows -> (tm, Dp) normalized embeddings.

    bgb_ref is a stacked (8, Dp) f32 constant block:
      row 0 = conv bias, row 1 = LN gamma, row 2 = LN beta (rows 3..7 unused).
    """
    # MXU: bf16 x bf16 -> f32 accumulate (no operand up-cast).
    y = jnp.dot(x_ref[...], w_ref[...], preferred_element_type=jnp.float32)
    y = y + bgb_ref[0:1, :]                                       # (tm, Dp) f32

    masked = d_pad > d_true
    if masked:
        lane = lax.broadcasted_iota(jnp.int32, y.shape, 1)
        lane_ok = lane < d_true
        y = jnp.where(lane_ok, y, 0.0)                            # robust to pad

    inv_d = jnp.float32(1.0 / float(d_true))
    mean = jnp.sum(y, axis=-1, keepdims=True) * inv_d
    yc = y - mean
    if masked:
        yc = jnp.where(lane_ok, yc, 0.0)                          # keep pad out of var
    var = jnp.sum(yc * yc, axis=-1, keepdims=True) * inv_d        # two-pass, stable
    rstd = lax.rsqrt(var + jnp.float32(eps))                      # EUP slot

    out = yc * rstd * bgb_ref[1:2, :] + bgb_ref[2:3, :]
    o_ref[...] = out.astype(o_ref.dtype)


# ----------------------------------------------------------------------------
# Tiling / VMEM sizing
# ----------------------------------------------------------------------------
def _vmem_budget():
    """(per-step working-set budget, explicit scoped-VMEM request) in bytes."""
    phys = 64 << 20                      # conservative: v7x per-TensorCore VMEM
    try:
        info = pltpu.get_tpu_info()
        phys = int(getattr(info, "vmem_capacity_bytes", phys))
    except Exception:
        pass
    limit = min(phys // 2, 48 << 20)     # v5e/v6e -> 48 MiB, v7x -> 32 MiB/TC
    budget = (limit * 3) // 4            # leave headroom for compiler temps
    return budget, limit


def _choose_tm(M: int, K: int, Dp: int, budget: int, requested=None) -> int:
    """Largest row tile under the VMEM budget; multiple of 16 (256 when large);
    even grid-step count so the parallel axis shards across both v7x cores."""
    if requested is not None:
        tm = int(requested)
    else:
        # Per-step working set: 2x double-buffered x (bf16) + 2x out (bf16)
        # + ~2 live f32 (tm, Dp) intermediates + resident weight + consts.
        fixed = 2 * K * Dp * 2 + 2 * 8 * Dp * 4
        per_row = 2 * K * 2 + 2 * Dp * 2 + 2 * Dp * 4
        tm = (budget - fixed) // per_row if budget > fixed else 256
        tm = max(16, min(int(tm), 1024))
    tm = max(1, min(tm, M))
    if tm < M:
        tm = (tm // 256) * 256 if tm >= 256 else max(16, (tm // 16) * 16)

    steps = -(-M // tm)
    if steps == 1 and M >= 32:
        # Split small M into two even tiles -> both TensorCores busy on v7x.
        tm = max(16, _round_up(-(-M // 2), 16))
    elif steps > 1 and steps % 2 == 1:
        # Nudge tile down so the step count becomes even.
        tm_even = _round_up(-(-M // (steps + 1)), 16)
        if 0 < tm_even <= tm:
            tm = tm_even
    return int(tm)


# ----------------------------------------------------------------------------
# pallas_call wrapper
# ----------------------------------------------------------------------------
def patch_embed_layernorm(x2d, w, bgb, *, d_true, eps=1e-5, tm=None,
                          out_dtype=None):
    """x2d: (M, K) bf16 patch matrix; w: (K, Dp) bf16; bgb: (8, Dp) f32."""
    M, K = x2d.shape
    Kw, Dp = w.shape
    assert Kw == K and bgb.shape == (8, Dp)
    if out_dtype is None:
        out_dtype = x2d.dtype

    budget, vmem_limit = _vmem_budget()
    tm = _choose_tm(M, K, Dp, budget, tm)
    grid = (pl.cdiv(M, tm),)

    kernel = partial(_patch_embed_ln_kernel, d_true=d_true, d_pad=Dp, eps=eps)

    cost = pl.CostEstimate(
        flops=2 * M * K * Dp,
        transcendentals=M,                      # one rsqrt per patch row
        bytes_accessed=(M * K * 2 + K * Dp * 2
                        + M * Dp * jnp.dtype(out_dtype).itemsize
                        + 8 * Dp * 4),
    )

    def build(single_buffer_consts):
        # Constant-index operands need only one VMEM copy.
        const_kw = ({"pipeline_mode": pl.Buffered(1)}
                    if single_buffer_consts else {})
        return pl.pallas_call(
            kernel,
            out_shape=jax.ShapeDtypeStruct((M, Dp), out_dtype),
            grid_spec=pltpu.PrefetchScalarGridSpec(
                num_scalar_prefetch=0,
                grid=grid,
                in_specs=[
                    pl.BlockSpec((tm, K), lambda i: (i, 0)),               # x rows
                    pl.BlockSpec((K, Dp), lambda i: (0, 0), **const_kw),   # weight
                    pl.BlockSpec((8, Dp), lambda i: (0, 0), **const_kw),   # b/γ/β
                ],
                out_specs=pl.BlockSpec((tm, Dp), lambda i: (i, 0)),
            ),
            compiler_params=pltpu.CompilerParams(
                dimension_semantics=("parallel",),      # row blocks independent
                vmem_limit_bytes=int(vmem_limit),
            ),
            cost_estimate=cost,
        )

    try:
        return build(True)(x2d, w, bgb)
    except Exception:
        # TODO(synk): pl.Buffered(1) unsupported on this jax build; fall back
        # to default double-buffering for the resident operands.
        return build(False)(x2d, w, bgb)


# ----------------------------------------------------------------------------
# Module wrapper
# ----------------------------------------------------------------------------
class VisionBackbonePallas:
    """Concrete VisionBackbone: patch-embed + LayerNorm featurizer in Pallas."""

    def __init__(self, *, image_size=32, patch_size=8, in_channels=4,
                 embed_dim=128, compute_dtype=jnp.bfloat16, ln_eps=1e-5, key=None):
        assert image_size % patch_size == 0
        self.image_size = image_size
        self.patch_size = patch_size
        self.in_channels = in_channels
        self._embed_dim = embed_dim
        self.compute_dtype = compute_dtype
        self.ln_eps = ln_eps

        K = in_channels * patch_size * patch_size
        self.k_true = K
        self.d_pad = _round_up(embed_dim, 128)    # lane-dense output stores

        if key is None:
            key = jax.random.PRNGKey(0)
        k_w, k_b = jax.random.split(key)

        # Deterministic synthetic parameters (Conv2d weight flattened [D, C*p*p]).
        w_conv = (jax.random.normal(k_w, (embed_dim, K), dtype=jnp.float32)
                  * (1.0 / jnp.sqrt(K)))
        w_full = jnp.zeros((K, self.d_pad), jnp.float32)
        w_full = w_full.at[:, :embed_dim].set(jnp.transpose(w_conv))
        self.w = w_full.astype(compute_dtype)                     # (K, Dp) bf16

        b = 0.01 * jax.random.normal(k_b, (embed_dim,), dtype=jnp.float32)
        bgb = jnp.zeros((8, self.d_pad), jnp.float32)
        bgb = bgb.at[0, :embed_dim].set(b)          # conv bias
        bgb = bgb.at[1, :embed_dim].set(1.0)        # LN gamma
        # row 2 (LN beta) stays zero
        self.bgb = bgb                                            # (8, Dp) f32

    # --- VisionBackbone-like properties -------------------------------------
    @property
    def embed_dim(self):
        return self._embed_dim

    @property
    def num_patches(self):
        g = self.image_size // self.patch_size
        return g * g

    @property
    def default_image_resolution(self):
        return (self.in_channels, self.image_size, self.image_size)

    @property
    def half_precision_dtype(self):
        return jnp.bfloat16

    # --- helpers -------------------------------------------------------------
    def _unfold(self, pixel_values):
        """NCHW image -> bf16 patch matrix [M, C*p*p] ordered (C, p, p) like Conv2d."""
        # TODO(synk): this relayout is a full HBM read+write done by XLA; in
        # production the image producer should emit patch-major/NHWC pixels so
        # the kernel reads them directly (no clean in-kernel equivalent for the
        # 6-D transpose).  bf16 cast happens before the transpose to halve the
        # bytes moved; no K padding is applied (full-K block is passed instead).
        B, C, H, W = pixel_values.shape
        p = self.patch_size
        Hp, Wp = H // p, W // p
        x = pixel_values.astype(self.compute_dtype)
        x = x.reshape(B, C, Hp, p, Wp, p)
        x = jnp.transpose(x, (0, 2, 4, 1, 3, 5))                  # [B,Hp,Wp,C,p,p]
        return x.reshape(B * Hp * Wp, C * p * p)

    # --- forward -------------------------------------------------------------
    def __call__(self, pixel_values, *, tm=None):
        """pixel_values: NCHW [B, C, H, W] -> patch features [B, num_patches, D]."""
        B, C, H, W = pixel_values.shape
        p = self.patch_size
        Hp, Wp = H // p, W // p

        x2d = self._unfold(pixel_values)                          # (M, K) bf16
        out = patch_embed_layernorm(
            x2d, self.w, self.bgb,
            d_true=self._embed_dim, eps=self.ln_eps, tm=tm,
            out_dtype=self.compute_dtype)                         # (M, Dp)
        if self.d_pad > self._embed_dim:
            out = out[:, :self._embed_dim]
        return out.reshape(B, Hp * Wp, self._embed_dim)

    # Pure-JAX f32 reference of the identical math (same bf16-rounded inputs).
    def reference_forward(self, pixel_values):
        B, C, H, W = pixel_values.shape
        p = self.patch_size
        Hp, Wp = H // p, W // p
        x = self._unfold(pixel_values).astype(jnp.float32)
        D = self._embed_dim
        w = self.w[:, :D].astype(jnp.float32)
        b = self.bgb[0:1, :D]
        g = self.bgb[1:2, :D]
        bt = self.bgb[2:3, :D]
        y = x @ w + b
        mu = y.mean(-1, keepdims=True)
        var = ((y - mu) ** 2).mean(-1, keepdims=True)
        out = (y - mu) * lax.rsqrt(var + self.ln_eps) * g + bt
        return out.reshape(B, Hp * Wp, D)

    # TODO(synk): get_fsdp_wrapping_policy / image_transform are PyTorch-FSDP /
    # PIL-preprocessing concerns with no Pallas equivalent; omitted.


if __name__ == "__main__":
    key = jax.random.PRNGKey(0)
    k_img, k_params = jax.random.split(key)

    # Small but lane/tile-friendly shapes: K = C*p*p = 256, D = 128, M = 32
    # (-> 2 parallel grid steps of 16 rows each, one per v7x TensorCore).
    B, C, H, W = 2, 4, 32, 32
    pixel_values = jax.random.normal(k_img, (B, C, H, W), dtype=jnp.float32)

    backbone = VisionBackbonePallas(image_size=H, patch_size=8, in_channels=C,
                                    embed_dim=128, key=k_params)

    feats = backbone(pixel_values)
    feats = jax.block_until_ready(feats)

    # Sanity: shape [B, num_patches, embed_dim] and finite values.
    assert feats.shape == (B, backbone.num_patches, backbone.embed_dim), feats.shape
    feats_f32 = feats.astype(jnp.float32)
    assert bool(jnp.all(jnp.isfinite(feats_f32)))

    # Cross-check against the pure-JAX f32 reference of the same bf16 math.
    ref = backbone.reference_forward(pixel_values)
    max_err = float(jnp.max(jnp.abs(feats_f32 - ref)))
    assert max_err < 3e-2, max_err   # bf16 output rounding bound

    print("KERNEL_OK")
</pallas_src>

<mosaic_0001>
module attributes {stable_mosaic.version = 11 : i64} {
  func.func @_patch_embed_ln_kernel(%arg0: i32, %arg1: memref<16x256xbf16, #tpu.memory_space<vmem>>, %arg2: memref<256x128xbf16, #tpu.memory_space<vmem>>, %arg3: memref<8x128xf32, #tpu.memory_space<vmem>>, %arg4: memref<16x128xbf16, #tpu.memory_space<vmem>>) attributes {dimension_semantics = [#tpu.dimension_semantics<parallel>], iteration_bounds = array<i64: 2>, scalar_prefetch = 0 : i64, scratch_operands = 0 : i64, tpu.core_type = #tpu.core_type<tc>, window_params = [{transform_indices = @transform_0, window_bounds = array<i64: 16, 256>}, {pipeline_mode = #tpu.pipeline_mode<synchronous>, transform_indices = @transform_1, window_bounds = array<i64: 256, 128>}, {pipeline_mode = #tpu.pipeline_mode<synchronous>, transform_indices = @transform_2, window_bounds = array<i64: 8, 128>}, {transform_indices = @transform_3, window_bounds = array<i64: 16, 128>}]} {
    %c0 = arith.constant 0 : index
    %c0_0 = arith.constant 0 : index
    %0 = vector.load %arg1[%c0, %c0_0] : memref<16x256xbf16, #tpu.memory_space<vmem>>, vector<16x256xbf16>
    %c0_1 = arith.constant 0 : index
    %c0_2 = arith.constant 0 : index
    %1 = vector.load %arg2[%c0_1, %c0_2] : memref<256x128xbf16, #tpu.memory_space<vmem>>, vector<256x128xbf16>
    %cst = arith.constant dense<0.000000e+00> : vector<16x128xf32>
    %2 = tpu.matmul %0, %1, %cst {dimension_numbers = #tpu.dot_dimension_numbers<[1], [0], [0], [1], [0, 0, 1, 1], [], []>} : vector<16x256xbf16>, vector<256x128xbf16>, vector<16x128xf32> -> vector<16x128xf32>
    %c0_3 = arith.constant 0 : index
    %c0_4 = arith.constant 0 : index
    %3 = vector.load %arg3[%c0_3, %c0_4] : memref<8x128xf32, #tpu.memory_space<vmem>>, vector<1x128xf32>
    %4 = vector.broadcast %3 : vector<1x128xf32> to vector<16x128xf32>
    %5 = arith.addf %2, %4 : vector<16x128xf32>
    %cst_5 = arith.constant dense<0.000000e+00> : vector<16xf32>
    %6 = vector.multi_reduction <add>, %5, %cst_5 [1] : vector<16x128xf32> to vector<16xf32>
    %7 = vector.shape_cast %6 : vector<16xf32> to vector<16x1xf32>
    %cst_6 = arith.constant 7.812500e-03 : f32
    %8 = vector.broadcast %cst_6 : f32 to vector<16x1xf32>
    %9 = arith.mulf %7, %8 : vector<16x1xf32>
    %10 = vector.broadcast %9 : vector<16x1xf32> to vector<16x128xf32>
    %11 = arith.subf %5, %10 : vector<16x128xf32>
    %12 = arith.mulf %11, %11 : vector<16x128xf32>
    %cst_7 = arith.constant dense<0.000000e+00> : vector<16xf32>
    %13 = vector.multi_reduction <add>, %12, %cst_7 [1] : vector<16x128xf32> to vector<16xf32>
    %14 = vector.shape_cast %13 : vector<16xf32> to vector<16x1xf32>
    %cst_8 = arith.constant 7.812500e-03 : f32
    %15 = vector.broadcast %cst_8 : f32 to vector<16x1xf32>
    %16 = arith.mulf %14, %15 : vector<16x1xf32>
    %cst_9 = arith.constant 9.99999974E-6 : f32
    %17 = vector.broadcast %cst_9 : f32 to vector<16x1xf32>
    %18 = arith.addf %16, %17 : vector<16x1xf32>
    %19 = math.rsqrt %18 : vector<16x1xf32>
    %20 = vector.broadcast %19 : vector<16x1xf32> to vector<16x128xf32>
    %21 = arith.mulf %11, %20 : vector<16x128xf32>
    %c1 = arith.constant 1 : index
    %c0_10 = arith.constant 0 : index
    %22 = vector.load %arg3[%c1, %c0_10] : memref<8x128xf32, #tpu.memory_space<vmem>>, vector<1x128xf32>
    %23 = vector.broadcast %22 : vector<1x128xf32> to vector<16x128xf32>
    %24 = arith.mulf %21, %23 : vector<16x128xf32>
    %c2 = arith.constant 2 : index
    %c0_11 = arith.constant 0 : index
    %25 = vector.load %arg3[%c2, %c0_11] : memref<8x128xf32, #tpu.memory_space<vmem>>, vector<1x128xf32>
    %26 = vector.broadcast %25 : vector<1x128xf32> to vector<16x128xf32>
    %27 = arith.addf %24, %26 : vector<16x128xf32>
    %28 = arith.truncf %27 : vector<16x128xf32> to vector<16x128xbf16>
    %c0_12 = arith.constant 0 : index
    %c0_13 = arith.constant 0 : index
    %29 = vector.load %arg4[%c0_12, %c0_13] : memref<16x128xbf16, #tpu.memory_space<vmem>>, vector<16x128xbf16>
    tpu.vector_store %arg4[%c0_12, %c0_13], %28 {strides = array<i32>} : memref<16x128xbf16, #tpu.memory_space<vmem>>, vector<16x128xbf16>,
    return
  }
  func.func @transform_0(%arg0: i32) -> (i32, i32) {
    %c0_i32 = arith.constant 0 : i32
    %c0_i32_0 = arith.constant 0 : i32
    return %arg0, %c0_i32 : i32, i32
  }
  func.func @transform_1(%arg0: i32) -> (i32, i32) {
    %c0_i32 = arith.constant 0 : i32
    %c0_i32_0 = arith.constant 0 : i32
    %c0_i32_1 = arith.constant 0 : i32
    return %c0_i32, %c0_i32_0 : i32, i32
  }
  func.func @transform_2(%arg0: i32) -> (i32, i32) {
    %c0_i32 = arith.constant 0 : i32
    %c0_i32_0 = arith.constant 0 : i32
    %c0_i32_1 = arith.constant 0 : i32
    return %c0_i32, %c0_i32_0 : i32, i32
  }
  func.func @transform_3(%arg0: i32) -> (i32, i32) {
    %c0_i32 = arith.constant 0 : i32
    %c0_i32_0 = arith.constant 0 : i32
    return %arg0, %c0_i32 : i32, i32
  }
}

module attributes {stable_mosaic.version = 11 : i64} {
  func.func @_patch_embed_ln_kernel(%arg0: i32, %arg1: memref<16x256xbf16, #tpu.memory_space<vmem>>, %arg2: memref<256x128xbf16, #tpu.memory_space<vmem>>, %arg3: memref<8x128xf32, #tpu.memory_space<vmem>>, %arg4: memref<16x128xbf16, #tpu.memory_space<vmem>>) attributes {dimension_semantics = [#tpu.dimension_semantics<parallel>], iteration_bounds = array<i64: 2>, scalar_prefetch = 0 : i64, scratch_operands = 0 : i64, tpu.core_type = #tpu.core_type<tc>, window_params = [{transform_indices = @transform_0, window_bounds = array<i64: 16, 256>}, {pipeline_mode = #tpu.pipeline_mode<synchronous>, transform_indices = @transform_1, window_bounds = array<i64: 256, 128>}, {pipeline_mode = #tpu.pipeline_mode<synchronous>, transform_indices = @transform_2, window_bounds = array<i64: 8, 128>}, {transform_indices = @transform_3, window_bounds = array<i64: 16, 128>}]} {
    %c0 = arith.constant 0 : index
    %c0_0 = arith.constant 0 : index
    %0 = vector.load %arg1[%c0, %c0_0] : memref<16x256xbf16, #tpu.memory_space<vmem>>, vector<16x256xbf16>
    %c0_1 = arith.constant 0 : index
    %c0_2 = arith.constant 0 : index
    %1 = vector.load %arg2[%c0_1, %c0_2] : memref<256x128xbf16, #tpu.memory_space<vmem>>, vector<256x128xbf16>
    %cst = arith.constant dense<0.000000e+00> : vector<16x128xf32>
    %2 = tpu.matmul %0, %1, %cst {dimension_numbers = #tpu.dot_dimension_numbers<[1], [0], [0], [1], [0, 0, 1, 1], [], []>} : vector<16x256xbf16>, vector<256x128xbf16>, vector<16x128xf32> -> vector<16x128xf32>
    %c0_3 = arith.constant 0 : index
    %c0_4 = arith.constant 0 : index
    %3 = vector.load %arg3[%c0_3, %c0_4] : memref<8x128xf32, #tpu.memory_space<vmem>>, vector<1x128xf32>
    %4 = vector.broadcast %3 : vector<1x128xf32> to vector<16x128xf32>
    %5 = arith.addf %2, %4 : vector<16x128xf32>
    %cst_5 = arith.constant dense<0.000000e+00> : vector<16xf32>
    %6 = vector.multi_reduction <add>, %5, %cst_5 [1] : vector<16x128xf32> to vector<16xf32>
    %7 = vector.shape_cast %6 : vector<16xf32> to vector<16x1xf32>
    %cst_6 = arith.constant 7.812500e-03 : f32
    %8 = vector.broadcast %cst_6 : f32 to vector<16x1xf32>
    %9 = arith.mulf %7, %8 : vector<16x1xf32>
    %10 = vector.broadcast %9 : vector<16x1xf32> to vector<16x128xf32>
    %11 = arith.subf %5, %10 : vector<16x128xf32>
    %12 = arith.mulf %11, %11 : vector<16x128xf32>
    %cst_7 = arith.constant dense<0.000000e+00> : vector<16xf32>
    %13 = vector.multi_reduction <add>, %12, %cst_7 [1] : vector<16x128xf32> to vector<16xf32>
    %14 = vector.shape_cast %13 : vector<16xf32> to vector<16x1xf32>
    %cst_8 = arith.constant 7.812500e-03 : f32
    %15 = vector.broadcast %cst_8 : f32 to vector<16x1xf32>
    %16 = arith.mulf %14, %15 : vector<16x1xf32>
    %cst_9 = arith.constant 9.99999974E-6 : f32
    %17 = vector.broadcast %cst_9 : f32 to vector<16x1xf32>
    %18 = arith.addf %16, %17 : vector<16x1xf32>
    %19 = math.rsqrt %18 : vector<16x1xf32>
    %20 = vector.broadcast %19 : vector<16x1xf32> to vector<16x128xf32>
    %21 = arith.mulf %11, %20 : vector<16x128xf32>
    %c1 = arith.constant 1 : index
    %c0_10 = arith.constant 0 : index
    %22 = vector.load %arg3[%c1, %c0_10] : memref<8x128xf32, #tpu.memory_space<vmem>>, vector<1x128xf32>
    %23 = vector.broadcast %22 : vector<1x128xf32> to vector<16x128xf32>
    %24 = arith.mulf %21, %23 : vector<16x128xf32>
    %c2 = arith.constant 2 : index
    %c0_11 = arith.constant 0 : index
    %25 = vector.load %arg3[%c2, %c0_11] : memref<8x128xf32, #tpu.memory_space<vmem>>, vector<1x128xf32>
    %26 = vector.broadcast %25 : vector<1x128xf32> to vector<16x128xf32>
    %27 = arith.addf %24, %26 : vector<16x128xf32>
    %28 = arith.truncf %27 : vector<16x128xf32> to vector<16x128xbf16>
    %c0_12 = arith.constant 0 : index
    %c0_13 = arith.constant 0 : index
    %29 = vector.load %arg4[%c0_12, %c0_13] : memref<16x128xbf16, #tpu.memory_space<vmem>>, vector<16x128xbf16>
    tpu.vector_store %arg4[%c0_12, %c0_13], %28 {strides = array<i32>} : memref<16x128xbf16, #tpu.memory_space<vmem>>, vector<16x128xbf16>,
    return
  }
  func.func @transform_0(%arg0: i32) -> (i32, i32) {
    %c0_i32 = arith.constant 0 : i32
    %c0_i32_0 = arith.constant 0 : i32
    return %arg0, %c0_i32 : i32, i32
  }
  func.func @transform_1(%arg0: i32) -> (i32, i32) {
    %c0_i32 = arith.constant 0 : i32
    %c0_i32_0 = arith.constant 0 : i32
    %c0_i32_1 = arith.constant 0 : i32
    return %c0_i32, %c0_i32_0 : i32, i32
  }
  func.func @transform_2(%arg0: i32) -> (i32, i32) {
    %c0_i32 = arith.constant 0 : i32
    %c0_i32_0 = arith.constant 0 : i32
    %c0_i32_1 = arith.constant 0 : i32
    return %c0_i32, %c0_i32_0 : i32, i32
  }
  func.func @transform_3(%arg0: i32) -> (i32, i32) {
    %c0_i32 = arith.constant 0 : i32
    %c0_i32_0 = arith.constant 0 : i32
    return %arg0, %c0_i32 : i32, i32
  }
}

</mosaic_0001>

<bundles_post_ra>
// kernel: tpu_custom_call.1
= control target key start
LH: loop header
LB: loop body
LE: loop exit
PB: predicated region body
PF: predicated region fallthrough
CT: control target
= control target key end

     0   :  { %8 = vsyncpa [#allocation3], 0  ;;  %s1155_s0 = inlined_call_operand.hbm [shape: bf16[32,256], index: 0, kind: input, shape index: {}]   ;;  %s1156_s1 = inlined_call_operand.hbm [shape: bf16[256,128], index: 1, kind: input, shape index: {}]   ;;  %s1157_s2 = inlined_call_operand.hbm [shape: f32[8,128], index: 2, kind: input, shape index: {}]   ;;  %s1158_s3 = inlined_call_operand.hbm [shape: bf16[32,128], index: 3, kind: output, shape index: {}]  }
   0x1   :  { %10 = vsyncpa [#allocation3 + $0x1], 0 }
   0x2   :  { %11 = vsyncpa [#allocation6], 0 }
   0x3   :  { %12 = vsyncpa [#allocation4], 0 }
   0x4   :  { %14 = vsyncpa [#allocation4 + $0x1], 0  ;;  %s916_s12 = smov 0   ;;  %s918_s13 = smov 0  }
   0x5   :  { %s920_s14 = smov 0   ;;  %s922_s15 = smov 0  }
   0x6 LB: > { %s937_s16 = sadd.s32 4294967295, %s884_s15   ;;  %s558_s17 = sadd.s32 4294967294, %s884_s15   ;;  %s884_s15 = sphi %s922_s15, %s1178_s15   ;;  %s880_s14 = sphi %s920_s14, %s1177_s14   ;;  %s876_s13 = sphi %s918_s13, %s1176_s13   ;;  %s872_s12 = sphi %s916_s12, %s1175_s12  }
   0x7   : > { %p40_p0 = scmp.ne.s32.totalorder %s876_s13, %s872_s12  ;;  %p1159_p1 = scmp.eq.s32.totalorder %s937_s16, 0 }
   0x8   : > { %p112_p3 = scmp.eq.s32.totalorder %s558_s17, 1  ;;  %p559_p5 = scmp.ge.s32.totalorder %s884_s15, 1 }
   0x9   : > { %p946_p4 = por %p1159_p1, %p40_p0  ;;  %p119_p7 = scmp.lt.s32.totalorder %s884_s15, 3 }
   0xa   : > { %p951_p6 = por %p112_p3, %p40_p0  ;;  %s886_s21 = smov [#allocation5]  }
   0xb   : > { %s1162_s18 = scalar_select %p946_p4, 1, 0 }
   0xc   : > { %s1163_s19 = scalar_select %p951_p6, 1, 0 }
   0xd   : > { %p956_p8 = pnand %p559_p5, %p119_p7  ;;  %s131_s22 = sshll.u32 %s886_s21, 4  ;;  %s960_s22 = int_to_ptr.vmem [resolvable:$true] %s131_s22 }
   0xe   : > { %s887_s24 = smov [#allocation7]   ;;  %s728_s28 = scalar_lea.hbm %s1156_s1, 2048 }
   0xf   : > { %p644_p9 = pneg %p956_p8  ;;  %s145_s25 = sshll.u32 %s887_s24, 4  ;;  %s971_s25 = int_to_ptr.vmem [resolvable:$true] %s145_s25 }
  0x10   : > { %p729_p12 = scmp.ne.s32.totalorder %s1156_s1, %s728_s28  ;;  %p735_p5 = scmp.lt.u32.totalorder %s728_s28, %s1156_s1 }
  0x11   : > { %p967_p11 = pnand %p644_p9, %p1159_p1 }
  0x13   : > { %p730_p13 = pneg %p967_p11 }
  0x15   : > { %p731_p0 = pnand %p730_p13, %p729_p12 }
  0x17   : > { %p732_p3 = pneg %p731_p0 }
  0x19   : > { %p737_p7 = pnand %p735_p5, %p732_p3 }
  0x1b   : > { %740 = shalt.err (!%p737_p7)
}
  0x1c   : > { %s741_s6 = scalar_lea.vmem %s960_s22, 2048  ;;  %p749_p2 = scmp.lt.s32.totalorder %s960_s22, %s960_s22 }
  0x1d   : > { %p742_p9 = scmp.ne.s32.totalorder %s960_s22, %s741_s6  ;;  %p750_p12 = scmp.lt.s32.totalorder %s741_s6, %s741_s6 }
  0x1f   : > { %p744_p10 = pnand %p742_p9, %p730_p13  ;;  %p751_p0 = por %p750_p12, %p749_p2 }
  0x21   : > { %p745_p1 = pneg %p744_p10 }
  0x23   : > { %p752_p6 = pnand %p751_p0, %p745_p1 }
  0x25   : > { %755 = shalt.err (!%p752_p6)
}
  0x26   : > { %s888_s7 = smov 64   ;;  %s889_s8 = smov 4  }
  0x27   : > { %647 = dma.hbm_to_vmem [thread:$0]  (!%p967_p11), %s1156_s1, 2048, %s960_s22, [#allocation6], %s888_s7, %s888_s7, %s889_s8  }
  0x28   : > { %s756_s21 = scalar_lea.hbm %s1157_s2, 128 }
  0x29   : > { %p757_p2 = scmp.ne.s32.totalorder %s1157_s2, %s756_s21  ;;  %p763_p10 = scmp.lt.u32.totalorder %s756_s21, %s1157_s2 }
  0x2b   : > { %p759_p1 = pnand %p757_p2, %p730_p13 }
  0x2d   : > { %p760_p6 = pneg %p759_p1 }
  0x2f   : > { %p765_p3 = pnand %p763_p10, %p760_p6 }
  0x31   : > { %768 = shalt.err (!%p765_p3)
}
  0x32   : > { %s769_s22 = scalar_lea.vmem %s971_s25, 128  ;;  %p777_p12 = scmp.lt.s32.totalorder %s971_s25, %s971_s25 }
  0x33   : > { %p770_p5 = scmp.ne.s32.totalorder %s971_s25, %s769_s22  ;;  %p778_p0 = scmp.lt.s32.totalorder %s769_s22, %s769_s22 }
  0x35   : > { %p772_p7 = pnand %p770_p5, %p730_p13  ;;  %p779_p2 = por %p778_p0, %p777_p12 }
  0x37   : > { %p773_p9 = pneg %p772_p7 }
  0x39   : > { %p780_p1 = pnand %p779_p2, %p773_p9 }
  0x3b   : > { %783 = shalt.err (!%p780_p1)
}
  0x3c   : > { %650 = dma.hbm_to_vmem [thread:$0]  (!%p967_p11), %s1157_s2, 128, %s971_s25, [#allocation6]  }
  0x3d   : > { %s1026_s4 = sadd.s32 1, %s884_s15   ;;  %s27_s23 = sadd.s32 1, %s880_s14 }
  0x3e   : > { %s24_s5 = ssub.s32 %s884_s15, %s1026_s4  ;;  %p34_p13 = scmp.ne.s32.totalorder %s880_s14, %s876_s13 }
  0x3f   : > { %p25_p6 = scmp.eq.s32.totalorder %s24_s5, 0  ;;  %p35_p10 = scmp.eq.s32.totalorder %s884_s15, 0 }
  0x40   : > { %p1166_p3 = scmp.eq.s32.totalorder %s937_s16, 1  ;;  %p661_p7 = scmp.lt.s32.totalorder %s884_s15, 2 }
  0x41   : > { %s1042_s7 = scalar_select %p25_p6, %s880_s14, %s27_s23  }
  0x42   : > { %p1036_p5 = por %p1166_p3, %p34_p13  ;;  %p36_p9 = por %p35_p10, %p34_p13 }
  0x43   : > { %s156_s8 = sand.u32 1, %s880_s14   ;;  %s601_s25 = sshll.u32 %s884_s15, 8 }
  0x44   : > { %s1167_s6 = scalar_select %p1036_p5, 1, 0 }
  0x45   : > { %s563_s9 = sshll.u32 %s156_s8, 4  ;;  %s1049_s17 = scalar_lea.hbm %s1155_s0, %s601_s25 }
  0x46   : > { %s160_s21 = scalar_lea.vmem [#allocation2], %s563_s9  ;;  %p1053_p11 = pnand %p661_p7, %p36_p9 }
  0x47   : > { %s168_s24 = sshll.u32 %s160_s21, 4  ;;  %s1057_s27 = scalar_lea.sflag [#allocation3], %s156_s8  ;;  %s1051_s24 = int_to_ptr.vmem [resolvable:$true] %s168_s24 }
  0x48   : > { %s784_s28 = scalar_lea.hbm %s1049_s17, 256  ;;  %p786_p0 = pneg %p1053_p11 }
  0x49   : > { %p785_p12 = scmp.ne.s32.totalorder %s1049_s17, %s784_s28  ;;  %s789_s30 = scalar_lea.hbm %s1155_s0, 512 }
  0x4a   : > { %p790_p13 = scmp.lt.u32.totalorder %s1049_s17, %s1155_s0  ;;  %p791_p6 = scmp.lt.u32.totalorder %s789_s30, %s784_s28 }
  0x4b   : > { %p787_p2 = pnand %p786_p0, %p785_p12  ;;  %p793_p3 = scmp.lt.u32.totalorder %s784_s28, %s1049_s17 }
  0x4c   : > { %p792_p10 = por %p791_p6, %p790_p13 }
  0x4d   : > { %p788_p1 = pneg %p787_p2 }
  0x4e   : > { %p794_p7 = por %p793_p3, %p792_p10 }
  0x50   : > { %p795_p9 = pnand %p794_p7, %p788_p1 }
  0x52   : > { %798 = shalt.err (!%p795_p9)
}
  0x53   : > { %s799_s8 = scalar_lea.vmem %s1051_s24, 256  ;;  %s890_s9 = smov [#allocation2]  }
  0x54   : > { %p800_p12 = scmp.ne.s32.totalorder %s1051_s24, %s799_s8  ;;  %s804_s25 = sshll.u32 %s890_s9, 4  ;;  %s805_s25 = int_to_ptr.vmem [resolvable:$false] %s804_s25 }
  0x55   : > { %s806_s10 = scalar_lea.vmem %s805_s25, 512  ;;  %p807_p4 = scmp.lt.s32.totalorder %s1051_s24, %s805_s25 }
  0x56   : > { %p802_p2 = pnand %p800_p12, %p786_p0  ;;  %p808_p13 = scmp.lt.s32.totalorder %s806_s10, %s799_s8 }
  0x58   : > { %p803_p5 = pneg %p802_p2  ;;  %p809_p6 = por %p808_p13, %p807_p4 }
  0x5a   : > { %p810_p10 = pnand %p809_p6, %p803_p5 }
  0x5c   : > { %813 = shalt.err (!%p810_p10)
}
  0x5d   : > { %s891_s11 = smov 128   ;;  %s892_s21 = smov 8  }
  0x5e   : > { %654 = dma.hbm_to_vmem [thread:$0]  (!%p1053_p11), %s1049_s17, 256, %s1051_s24, %s1057_s27, %s891_s11, %s891_s11, %s892_s21  }
  0x5f   : > { %180 = sbr.rel (%p956_p8) target bundleno = 688 (0x2b0), region = 32  ;;  %s1088_s28 = sand.u32 (!%p956_p8), 1, %s876_s13  }
  0x60   : > { %s568_s22 = sshll.u32 (!%p956_p8), %s1088_s28, 4  ;;  %s183_s29 = scalar_lea.sflag (!%p956_p8), [#allocation3], %s1088_s28 }
  0x61   : > { %s1092_s30 = scalar_lea.vmem (!%p956_p8), [#allocation2], %s568_s22  ;;  %p1169_p4 = scmp.ne.s32.totalorder (!%p956_p8), %s1162_s18, 0 }
  0x66   : > { %859 = dma.done.wait (%p1169_p4), %s183_s29, 256  }
  0x67   : > { %861 = vsyncadd (%p1169_p4), %s183_s29, 4294967040  ;;  %p1170_p5 = scmp.eq.s32.totalorder %s937_s16, 0 }
  0x69   : > { %863 = dma.done.wait (%p1170_p5), [#allocation6], 2176   ;;  %p1171_p8 = pmov %p1170_p5 }
  0x6a   : > { %v705_v0 = vld [vmem:[#allocation5 + $0x40] sm:$0xff]   ;;  %v707_v2 = vld [vmem:[#allocation5 + $0x48] sm:$0xff]   ;;  %v709_v4 = vld [vmem:[#allocation5 + $0x50] sm:$0xff]   ;;  %s571_s18 = sshll.u32 %s1088_s28, 3  ;;  %s604_s20 = sshll.u32 %s937_s16, 7 }
  0x6b   : > { %865 = vsyncadd (%p1171_p8), [#allocation6], 4294965120  ;;  %v706_v1 = vld [vmem:[#allocation5] sm:$0xff]   ;;  %610 = vmatprep.subr.bf16.mxu0 %v705_v0  ;;  %v708_v3 = vld [vmem:[#allocation5 + $0x8] sm:$0xff]   ;;  %s216_s17 = scalar_lea.vmem [#allocation8], %s571_s18  ;;  %s1109_s23 = scalar_lea.hbm %s1158_s3, %s604_s20 }
  0x6c   : > { %611 = vmatpush3.bf16.msra.mxu0 %v706_v1  ;;  %v710_v5 = vld [vmem:[#allocation5 + $0x10] sm:$0xff]   ;;  %v711_v6 = vld [vmem:[#allocation5 + $0x58] sm:$0xff]   ;;  %v713_v8 = vld [vmem:[#allocation5 + $0x60] sm:$0xff]   ;;  %s466_s24 = sshll.u32 %s216_s17, 4  ;;  %s453_s5 = scalar_lea.sflag [#allocation4], %s1088_s28  ;;  %s1111_s24 = int_to_ptr.vmem [resolvable:$true] %s466_s24 }
  0x6d   : > { %612 = vmatprep.subr.bf16.mxu0 %v707_v2  ;;  %v712_v7 = vld [vmem:[#allocation5 + $0x18] sm:$0xff]   ;;  %v714_v9 = vld [vmem:[#allocation5 + $0x20] sm:$0xff]   ;;  %v715_v10 = vld [vmem:[#allocation5 + $0x68] sm:$0xff]   ;;  %s814_s8 = scalar_lea.vmem %s1111_s24, 128  ;;  %p1172_p0 = scmp.ne.s32.totalorder %s1167_s6, 0 }
  0x6e   : > { %v723_v11 = vld [vmem:[%s1092_s30 + $0x4] ss:$8 sps:$4 sm:$0xff]   ;;  %v721_v17 = vld [vmem:[%s1092_s30] ss:$8 sps:$4 sm:$0xff]   ;;  %p815_p11 = scmp.ne.s32.totalorder %s1111_s24, %s814_s8  ;;  %s893_s16 = smov [#allocation8]  }
  0x6f   : > { %v716_v12 = vld [vmem:[#allocation5 + $0x28] sm:$0xff]   ;;  %397 = vmatprep.mubr.bf16.mxu0 %v723_v11  ;;  %v717_v13 = vld [vmem:[#allocation5 + $0x70] sm:$0xff]   ;;  %v719_v15 = vld [vmem:[#allocation5 + $0x78] sm:$0xff]   ;;  %s818_s9 = sshll.u32 %s893_s16, 4  ;;  %s819_s9 = int_to_ptr.vmem [resolvable:$false] %s818_s9 }
  0x70   : > { %613 = vmatpush3.bf16.msra.mxu0 %v708_v3  ;;  %v718_v14 = vld [vmem:[#allocation5 + $0x30] sm:$0xff]   ;;  %v720_v16 = vld [vmem:[#allocation5 + $0x38] sm:$0xff]   ;;  %v572_v20 = vld [vmem:[#allocation7] ss:$0 sm:$0xff]  ;;  %p816_p1 = pnand %p815_p11, %p1172_p0  ;;  %s820_s25 = scalar_lea.vmem %s819_s9, 256 }
  0x71   : > { %614 = vmatprep.subr.bf16.mxu0 %v709_v4  ;;  %v591_v43 = vld [vmem:[#allocation7 + $0x1] ss:$0 sm:$0xff]  ;;  %v592_v47 = vld [vmem:[#allocation7 + $0x2] ss:$0 sm:$0xff]  ;;  %p821_p7 = scmp.lt.s32.totalorder %s1111_s24, %s819_s9  ;;  %p822_p9 = scmp.lt.s32.totalorder %s820_s25, %s814_s8 }
  0x72   : > { %p817_p3 = pneg %p816_p1 }
  0x73   : > { %p823_p12 = por %p822_p9, %p821_p7 }
  0x74   : > { %615 = vmatpush3.bf16.msra.mxu0 %v710_v5 }
  0x75   : > { %616 = vmatprep.subr.bf16.mxu0 %v711_v6  ;;  %p824_p2 = pnand %p823_p12, %p817_p3 }
  0x78   : > { %617 = vmatpush3.bf16.msra.mxu0 %v712_v7 }
  0x79   : > { %618 = vmatprep.subr.bf16.mxu0 %v713_v8 }
  0x7c   : > { %619 = vmatpush3.bf16.msra.mxu0 %v714_v9 }
  0x7d   : > { %620 = vmatprep.subr.bf16.mxu0 %v715_v10 }
  0x80   : > { %621 = vmatpush3.bf16.msra.mxu0 %v716_v12 }
  0x81   : > { %622 = vmatprep.subr.bf16.mxu0 %v717_v13 }
  0x84   : > { %623 = vmatpush3.bf16.msra.mxu0 %v718_v14 }
  0x85   : > { %624 = vmatprep.subr.bf16.mxu0 %v719_v15 }
  0x88   : > { %625 = vmatpush3.bf16.msra.mxu0 %v720_v16 }
  0x8b   : > { %398 = vmatmul.mubr.bf16.vlgmr.msra.gmra.mrb[0].mxu0 %v721_v17 }
 0x15e   : > { %v626_v18 = vpop.f32.mrb[0].mxu0 }
 0x15f   : > { %v627_v19 = vpop.f32.mrb[1].mxu0 }
 0x160   : > { %v628_v21 = vadd.f32 %v627_v19, %v626_v18  ;;  %v629_v22 = vpop.f32.mrb[2].mxu0 }
 0x161   : > { %v630_v23 = vpop.f32.mrb[3].mxu0 }
 0x162   : > { %v631_v24 = vadd.f32 %v630_v23, %v629_v22  ;;  %v400_v25 = vadd.f32 %v628_v21, %v572_v20 }
 0x164   : > { %406 = vadd.xlane.f32.xlu0 %v400_v25  ;;  %v403_v26 = vadd.f32 %v631_v24, %v572_v20 }
 0x168   : > { %408 = vadd.xlane.f32.xlu0 %v403_v26 }
 0x1f1   : > { %v407_v27 = vpop.xlane.xlu0 %406 }
 0x1f2   : > { %v410_v28 = vmul.f32 0.0078125, %v407_v27 }
 0x1f4   : > { %v412_v29 = vsub.f32 %v400_v25, %v410_v28 }
 0x1f5   : > { %v409_v30 = vpop.xlane.xlu0 %408 }
 0x1f6   : > { %v411_v31 = vmul.f32 0.0078125, %v409_v30  ;;  %v414_v32 = vmul.f32 %v412_v29, %v412_v29 }
 0x1f8   : > { %v413_v33 = vsub.f32 %v403_v26, %v411_v31  ;;  %416 = vadd.xlane.f32.xlu1 %v414_v32 }
 0x1fa   : > { %v415_v34 = vmul.f32 %v413_v33, %v413_v33 }
 0x1fc   : > { %418 = vadd.xlane.f32.xlu1 %v415_v34 }
 0x285   : > { %v417_v35 = vpop.xlane.xlu1 %416 }
 0x286   : > { %v420_v36 = vmul.f32 0.0078125, %v417_v35 }
 0x288   : > { %v422_v37 = vadd.f32 1e-05, %v420_v36 }
 0x289   : > { %v419_v38 = vpop.xlane.xlu1 %418 }
 0x28a   : > { %724 = vrsqrt.f32 %v422_v37  ;;  %v421_v39 = vmul.f32 0.0078125, %v419_v38 }
 0x28c   : > { %v423_v40 = vadd.f32 1e-05, %v421_v39 }
 0x28e   : > { %726 = vrsqrt.f32 %v423_v40 }
 0x294   : > { %v725_v41 = vpop.eup %724 }
 0x295   : > { %v426_v42 = vmul.f32 %v725_v41, %v412_v29 }
 0x297   : > { %v433_v45 = vmul.f32 %v591_v43, %v426_v42 }
 0x298   : > { %v727_v44 = vpop.eup %726 }
 0x299   : > { %v427_v46 = vmul.f32 %v727_v44, %v413_v33  ;;  %v440_v49 = vadd.f32 %v592_v47, %v433_v45 }
 0x29b   : > { %v434_v48 = vmul.f32 %v591_v43, %v427_v46 }
 0x29d   : > { %v441_v50 = vadd.f32 %v592_v47, %v434_v48 }
 0x29f   : > { %v608_v51 = vpack.c.bf16 %v441_v50, %v440_v49 }
 0x2a1   : > { %609 = vst [vmem:[%s216_s17] sm:$0xff] %v608_v51  }
 0x2a2   : > { %827 = shalt.err (!%p824_p2)
}
 0x2a3   : > { %s828_s10 = scalar_lea.hbm %s1109_s23, 128  ;;  %s832_s22 = scalar_lea.hbm %s1158_s3, 256 }
 0x2a4   : > { %p829_p13 = scmp.ne.s32.totalorder %s1109_s23, %s828_s10  ;;  %p833_p4 = scmp.lt.u32.totalorder %s1109_s23, %s1158_s3 }
 0x2a5   : > { %p834_p5 = scmp.lt.u32.totalorder %s832_s22, %s828_s10  ;;  %p836_p11 = scmp.lt.u32.totalorder %s828_s10, %s1109_s23 }
 0x2a6   : > { %p830_p6 = pnand %p829_p13, %p1172_p0 }
 0x2a7   : > { %p835_p8 = por %p834_p5, %p833_p4 }
 0x2a8   : > { %p831_p10 = pneg %p830_p6 }
 0x2a9   : > { %p837_p1 = por %p836_p11, %p835_p8 }
 0x2ab   : > { %p838_p3 = pnand %p837_p1, %p831_p10 }
 0x2ad   : > { %841 = shalt.err (!%p838_p3)
}
 0x2ae   : > { %s894_s18 = smov 64   ;;  %s895_s20 = smov 4  }
 0x2af   : > { %642 = dma.vmem_to_hbm [thread:$0]  (%p1172_p0), %s1111_s24, 128, %s1109_s23, %s453_s5, %s894_s18, %s894_s18, %s895_s20  }
 0x2b0 PF: > { %s481_s17 = sand.u32 1, %s872_s12   ;;  %p1173_p7 = scmp.ne.s32.totalorder %s1163_s19, 0 }
 0x2b1   : > { %p1174_p9 = scmp.ge.s32.totalorder %s884_s15, 2  ;;  %s482_s26 = scalar_lea.sflag [#allocation4], %s481_s17 }
 0x2b3   : > { %p656_p12 = pnand %p1174_p9, %p1173_p7 }
 0x2b5   : > { %867 = dma.done.wait (!%p656_p12), %s482_s26, 128  }
 0x2b6   : > { %869 = vsyncadd (!%p656_p12), %s482_s26, 4294967168  ;;  %p17_p2 = scmp.ge.s32.totalorder %s1026_s4, 4   ;;  %s1175_s12 = smov %s876_s13 }
 0x2b7   : > { %s1176_s13 = smov %s880_s14  ;;  %s1177_s14 = smov %s1042_s7 }
 0x2b8   : > { %s1178_s15 = smov %s1026_s4  ;;  %19 = sbr.rel (!%p17_p2) target bundleno = 6 (0x6), region = 85 }
 0x2bf   :  { %487 = vsyncpa [#allocation3], 1 }
 0x2c0   :  { %489 = vsyncpa [#allocation3 + $0x1], 1 }
 0x2c1   :  { %490 = vsyncpa [#allocation6], 1 }
 0x2c2   :  { %491 = vsyncpa [#allocation4], 1 }
 0x2c3   :  { %493 = vsyncpa [#allocation4 + $0x1], 1 }

// kernel: tpu_custom_call.1
= control target key start
LH: loop header
LB: loop body
LE: loop exit
PB: predicated region body
PF: predicated region fallthrough
CT: control target
= control target key end

     0   :  { %8 = vsyncpa [#allocation3], 0  ;;  %s1155_s0 = inlined_call_operand.hbm [shape: bf16[32,256], index: 0, kind: input, shape index: {}]   ;;  %s1156_s1 = inlined_call_operand.hbm [shape: bf16[256,128], index: 1, kind: input, shape index: {}]   ;;  %s1157_s2 = inlined_call_operand.hbm [shape: f32[8,128], index: 2, kind: input, shape index: {}]   ;;  %s1158_s3 = inlined_call_operand.hbm [shape: bf16[32,128], index: 3, kind: output, shape index: {}]  }
   0x1   :  { %10 = vsyncpa [#allocation3 + $0x1], 0 }
   0x2   :  { %11 = vsyncpa [#allocation6], 0 }
   0x3   :  { %12 = vsyncpa [#allocation4], 0 }
   0x4   :  { %14 = vsyncpa [#allocation4 + $0x1], 0  ;;  %s916_s12 = smov 0   ;;  %s918_s13 = smov 0  }
   0x5   :  { %s920_s14 = smov 0   ;;  %s922_s15 = smov 0  }
   0x6 LB: > { %s937_s16 = sadd.s32 4294967295, %s884_s15   ;;  %s558_s17 = sadd.s32 4294967294, %s884_s15   ;;  %s884_s15 = sphi %s922_s15, %s1178_s15   ;;  %s880_s14 = sphi %s920_s14, %s1177_s14   ;;  %s876_s13 = sphi %s918_s13, %s1176_s13   ;;  %s872_s12 = sphi %s916_s12, %s1175_s12  }
   0x7   : > { %p40_p0 = scmp.ne.s32.totalorder %s876_s13, %s872_s12  ;;  %p1159_p1 = scmp.eq.s32.totalorder %s937_s16, 0 }
   0x8   : > { %p112_p3 = scmp.eq.s32.totalorder %s558_s17, 1  ;;  %p559_p5 = scmp.ge.s32.totalorder %s884_s15, 1 }
   0x9   : > { %p946_p4 = por %p1159_p1, %p40_p0  ;;  %p119_p7 = scmp.lt.s32.totalorder %s884_s15, 3 }
   0xa   : > { %p951_p6 = por %p112_p3, %p40_p0  ;;  %s886_s21 = smov [#allocation5]  }
   0xb   : > { %s1162_s18 = scalar_select %p946_p4, 1, 0 }
   0xc   : > { %s1163_s19 = scalar_select %p951_p6, 1, 0 }
   0xd   : > { %p956_p8 = pnand %p559_p5, %p119_p7  ;;  %s131_s22 = sshll.u32 %s886_s21, 4  ;;  %s960_s22 = int_to_ptr.vmem [resolvable:$true] %s131_s22 }
   0xe   : > { %s887_s24 = smov [#allocation7]   ;;  %s728_s28 = scalar_lea.hbm %s1156_s1, 2048 }
   0xf   : > { %p644_p9 = pneg %p956_p8  ;;  %s145_s25 = sshll.u32 %s887_s24, 4  ;;  %s971_s25 = int_to_ptr.vmem [resolvable:$true] %s145_s25 }
  0x10   : > { %p729_p12 = scmp.ne.s32.totalorder %s1156_s1, %s728_s28  ;;  %p735_p5 = scmp.lt.u32.totalorder %s728_s28, %s1156_s1 }
  0x11   : > { %p967_p11 = pnand %p644_p9, %p1159_p1 }
  0x13   : > { %p730_p13 = pneg %p967_p11 }
  0x15   : > { %p731_p0 = pnand %p730_p13, %p729_p12 }
  0x17   : > { %p732_p3 = pneg %p731_p0 }
  0x19   : > { %p737_p7 = pnand %p735_p5, %p732_p3 }
  0x1b   : > { %740 = shalt.err (!%p737_p7)
}
  0x1c   : > { %s741_s6 = scalar_lea.vmem %s960_s22, 2048  ;;  %p749_p2 = scmp.lt.s32.totalorder %s960_s22, %s960_s22 }
  0x1d   : > { %p742_p9 = scmp.ne.s32.totalorder %s960_s22, %s741_s6  ;;  %p750_p12 = scmp.lt.s32.totalorder %s741_s6, %s741_s6 }
  0x1f   : > { %p744_p10 = pnand %p742_p9, %p730_p13  ;;  %p751_p0 = por %p750_p12, %p749_p2 }
  0x21   : > { %p745_p1 = pneg %p744_p10 }
  0x23   : > { %p752_p6 = pnand %p751_p0, %p745_p1 }
  0x25   : > { %755 = shalt.err (!%p752_p6)
}
  0x26   : > { %s888_s7 = smov 64   ;;  %s889_s8 = smov 4  }
  0x27   : > { %647 = dma.hbm_to_vmem [thread:$0]  (!%p967_p11), %s1156_s1, 2048, %s960_s22, [#allocation6], %s888_s7, %s888_s7, %s889_s8  }
  0x28   : > { %s756_s21 = scalar_lea.hbm %s1157_s2, 128 }
  0x29   : > { %p757_p2 = scmp.ne.s32.totalorder %s1157_s2, %s756_s21  ;;  %p763_p10 = scmp.lt.u32.totalorder %s756_s21, %s1157_s2 }
  0x2b   : > { %p759_p1 = pnand %p757_p2, %p730_p13 }
  0x2d   : > { %p760_p6 = pneg %p759_p1 }
  0x2f   : > { %p765_p3 = pnand %p763_p10, %p760_p6 }
  0x31   : > { %768 = shalt.err (!%p765_p3)
}
  0x32   : > { %s769_s22 = scalar_lea.vmem %s971_s25, 128  ;;  %p777_p12 = scmp.lt.s32.totalorder %s971_s25, %s971_s25 }
  0x33   : > { %p770_p5 = scmp.ne.s32.totalorder %s971_s25, %s769_s22  ;;  %p778_p0 = scmp.lt.s32.totalorder %s769_s22, %s769_s22 }
  0x35   : > { %p772_p7 = pnand %p770_p5, %p730_p13  ;;  %p779_p2 = por %p778_p0, %p777_p12 }
  0x37   : > { %p773_p9 = pneg %p772_p7 }
  0x39   : > { %p780_p1 = pnand %p779_p2, %p773_p9 }
  0x3b   : > { %783 = shalt.err (!%p780_p1)
}
  0x3c   : > { %650 = dma.hbm_to_vmem [thread:$0]  (!%p967_p11), %s1157_s2, 128, %s971_s25, [#allocation6]  }
  0x3d   : > { %s1026_s4 = sadd.s32 1, %s884_s15   ;;  %s27_s23 = sadd.s32 1, %s880_s14 }
  0x3e   : > { %s24_s5 = ssub.s32 %s884_s15, %s1026_s4  ;;  %p34_p13 = scmp.ne.s32.totalorder %s880_s14, %s876_s13 }
  0x3f   : > { %p25_p6 = scmp.eq.s32.totalorder %s24_s5, 0  ;;  %p35_p10 = scmp.eq.s32.totalorder %s884_s15, 0 }
  0x40   : > { %p1166_p3 = scmp.eq.s32.totalorder %s937_s16, 1  ;;  %p661_p7 = scmp.lt.s32.totalorder %s884_s15, 2 }
  0x41   : > { %s1042_s7 = scalar_select %p25_p6, %s880_s14, %s27_s23  }
  0x42   : > { %p1036_p5 = por %p1166_p3, %p34_p13  ;;  %p36_p9 = por %p35_p10, %p34_p13 }
  0x43   : > { %s156_s8 = sand.u32 1, %s880_s14   ;;  %s601_s25 = sshll.u32 %s884_s15, 8 }
  0x44   : > { %s1167_s6 = scalar_select %p1036_p5, 1, 0 }
  0x45   : > { %s563_s9 = sshll.u32 %s156_s8, 4  ;;  %s1049_s17 = scalar_lea.hbm %s1155_s0, %s601_s25 }
  0x46   : > { %s160_s21 = scalar_lea.vmem [#allocation2], %s563_s9  ;;  %p1053_p11 = pnand %p661_p7, %p36_p9 }
  0x47   : > { %s168_s24 = sshll.u32 %s160_s21, 4  ;;  %s1057_s27 = scalar_lea.sflag [#allocation3], %s156_s8  ;;  %s1051_s24 = int_to_ptr.vmem [resolvable:$true] %s168_s24 }
  0x48   : > { %s784_s28 = scalar_lea.hbm %s1049_s17, 256  ;;  %p786_p0 = pneg %p1053_p11 }
  0x49   : > { %p785_p12 = scmp.ne.s32.totalorder %s1049_s17, %s784_s28  ;;  %s789_s30 = scalar_lea.hbm %s1155_s0, 512 }
  0x4a   : > { %p790_p13 = scmp.lt.u32.totalorder %s1049_s17, %s1155_s0  ;;  %p791_p6 = scmp.lt.u32.totalorder %s789_s30, %s784_s28 }
  0x4b   : > { %p787_p2 = pnand %p786_p0, %p785_p12  ;;  %p793_p3 = scmp.lt.u32.totalorder %s784_s28, %s1049_s17 }
  0x4c   : > { %p792_p10 = por %p791_p6, %p790_p13 }
  0x4d   : > { %p788_p1 = pneg %p787_p2 }
  0x4e   : > { %p794_p7 = por %p793_p3, %p792_p10 }
  0x50   : > { %p795_p9 = pnand %p794_p7, %p788_p1 }
  0x52   : > { %798 = shalt.err (!%p795_p9)
}
  0x53   : > { %s799_s8 = scalar_lea.vmem %s1051_s24, 256  ;;  %s890_s9 = smov [#allocation2]  }
  0x54   : > { %p800_p12 = scmp.ne.s32.totalorder %s1051_s24, %s799_s8  ;;  %s804_s25 = sshll.u32 %s890_s9, 4  ;;  %s805_s25 = int_to_ptr.vmem [resolvable:$false] %s804_s25 }
  0x55   : > { %s806_s10 = scalar_lea.vmem %s805_s25, 512  ;;  %p807_p4 = scmp.lt.s32.totalorder %s1051_s24, %s805_s25 }
  0x56   : > { %p802_p2 = pnand %p800_p12, %p786_p0  ;;  %p808_p13 = scmp.lt.s32.totalorder %s806_s10, %s799_s8 }
  0x58   : > { %p803_p5 = pneg %p802_p2  ;;  %p809_p6 = por %p808_p13, %p807_p4 }
  0x5a   : > { %p810_p10 = pnand %p809_p6, %p803_p5 }
  0x5c   : > { %813 = shalt.err (!%p810_p10)
}
  0x5d   : > { %s891_s11 = smov 128   ;;  %s892_s21 = smov 8  }
  0x5e   : > { %654 = dma.hbm_to_vmem [thread:$0]  (!%p1053_p11), %s1049_s17, 256, %s1051_s24, %s1057_s27, %s891_s11, %s891_s11, %s892_s21  }
  0x5f   : > { %180 = sbr.rel (%p956_p8) target bundleno = 688 (0x2b0), region = 32  ;;  %s1088_s28 = sand.u32 (!%p956_p8), 1, %s876_s13  }
  0x60   : > { %s568_s22 = sshll.u32 (!%p956_p8), %s1088_s28, 4  ;;  %s183_s29 = scalar_lea.sflag (!%p956_p8), [#allocation3], %s1088_s28 }
  0x61   : > { %s1092_s30 = scalar_lea.vmem (!%p956_p8), [#allocation2], %s568_s22  ;;  %p1169_p4 = scmp.ne.s32.totalorder (!%p956_p8), %s1162_s18, 0 }
  0x66   : > { %859 = dma.done.wait (%p1169_p4), %s183_s29, 256  }
  0x67   : > { %861 = vsyncadd (%p1169_p4), %s183_s29, 4294967040  ;;  %p1170_p5 = scmp.eq.s32.totalorder %s937_s16, 0 }
  0x69   : > { %863 = dma.done.wait (%p1170_p5), [#allocation6], 2176   ;;  %p1171_p8 = pmov %p1170_p5 }
  0x6a   : > { %v705_v0 = vld [vmem:[#allocation5 + $0x40] sm:$0xff]   ;;  %v707_v2 = vld [vmem:[#allocation5 + $0x48] sm:$0xff]   ;;  %v709_v4 = vld [vmem:[#allocation5 + $0x50] sm:$0xff]   ;;  %s571_s18 = sshll.u32 %s1088_s28, 3  ;;  %s604_s20 = sshll.u32 %s937_s16, 7 }
  0x6b   : > { %865 = vsyncadd (%p1171_p8), [#allocation6], 4294965120  ;;  %v706_v1 = vld [vmem:[#allocation5] sm:$0xff]   ;;  %610 = vmatprep.subr.bf16.mxu0 %v705_v0  ;;  %v708_v3 = vld [vmem:[#allocation5 + $0x8] sm:$0xff]   ;;  %s216_s17 = scalar_lea.vmem [#allocation8], %s571_s18  ;;  %s1109_s23 = scalar_lea.hbm %s1158_s3, %s604_s20 }
  0x6c   : > { %611 = vmatpush3.bf16.msra.mxu0 %v706_v1  ;;  %v710_v5 = vld [vmem:[#allocation5 + $0x10] sm:$0xff]   ;;  %v711_v6 = vld [vmem:[#allocation5 + $0x58] sm:$0xff]   ;;  %v713_v8 = vld [vmem:[#allocation5 + $0x60] sm:$0xff]   ;;  %s466_s24 = sshll.u32 %s216_s17, 4  ;;  %s453_s5 = scalar_lea.sflag [#allocation4], %s1088_s28  ;;  %s1111_s24 = int_to_ptr.vmem [resolvable:$true] %s466_s24 }
  0x6d   : > { %612 = vmatprep.subr.bf16.mxu0 %v707_v2  ;;  %v712_v7 = vld [vmem:[#allocation5 + $0x18] sm:$0xff]   ;;  %v714_v9 = vld [vmem:[#allocation5 + $0x20] sm:$0xff]   ;;  %v715_v10 = vld [vmem:[#allocation5 + $0x68] sm:$0xff]   ;;  %s814_s8 = scalar_lea.vmem %s1111_s24, 128  ;;  %p1172_p0 = scmp.ne.s32.totalorder %s1167_s6, 0 }
  0x6e   : > { %v723_v11 = vld [vmem:[%s1092_s30 + $0x4] ss:$8 sps:$4 sm:$0xff]   ;;  %v721_v17 = vld [vmem:[%s1092_s30] ss:$8 sps:$4 sm:$0xff]   ;;  %p815_p11 = scmp.ne.s32.totalorder %s1111_s24, %s814_s8  ;;  %s893_s16 = smov [#allocation8]  }
  0x6f   : > { %v716_v12 = vld [vmem:[#allocation5 + $0x28] sm:$0xff]   ;;  %397 = vmatprep.mubr.bf16.mxu0 %v723_v11  ;;  %v717_v13 = vld [vmem:[#allocation5 + $0x70] sm:$0xff]   ;;  %v719_v15 = vld [vmem:[#allocation5 + $0x78] sm:$0xff]   ;;  %s818_s9 = sshll.u32 %s893_s16, 4  ;;  %s819_s9 = int_to_ptr.vmem [resolvable:$false] %s818_s9 }
  0x70   : > { %613 = vmatpush3.bf16.msra.mxu0 %v708_v3  ;;  %v718_v14 = vld [vmem:[#allocation5 + $0x30] sm:$0xff]   ;;  %v720_v16 = vld [vmem:[#allocation5 + $0x38] sm:$0xff]   ;;  %v572_v20 = vld [vmem:[#allocation7] ss:$0 sm:$0xff]  ;;  %p816_p1 = pnand %p815_p11, %p1172_p0  ;;  %s820_s25 = scalar_lea.vmem %s819_s9, 256 }
  0x71   : > { %614 = vmatprep.subr.bf16.mxu0 %v709_v4  ;;  %v591_v43 = vld [vmem:[#allocation7 + $0x1] ss:$0 sm:$0xff]  ;;  %v592_v47 = vld [vmem:[#allocation7 + $0x2] ss:$0 sm:$0xff]  ;;  %p821_p7 = scmp.lt.s32.totalorder %s1111_s24, %s819_s9  ;;  %p822_p9 = scmp.lt.s32.totalorder %s820_s25, %s814_s8 }
  0x72   : > { %p817_p3 = pneg %p816_p1 }
  0x73   : > { %p823_p12 = por %p822_p9, %p821_p7 }
  0x74   : > { %615 = vmatpush3.bf16.msra.mxu0 %v710_v5 }
  0x75   : > { %616 = vmatprep.subr.bf16.mxu0 %v711_v6  ;;  %p824_p2 = pnand %p823_p12, %p817_p3 }
  0x78   : > { %617 = vmatpush3.bf16.msra.mxu0 %v712_v7 }
  0x79   : > { %618 = vmatprep.subr.bf16.mxu0 %v713_v8 }
  0x7c   : > { %619 = vmatpush3.bf16.msra.mxu0 %v714_v9 }
  0x7d   : > { %620 = vmatprep.subr.bf16.mxu0 %v715_v10 }
  0x80   : > { %621 = vmatpush3.bf16.msra.mxu0 %v716_v12 }
  0x81   : > { %622 = vmatprep.subr.bf16.mxu0 %v717_v13 }
  0x84   : > { %623 = vmatpush3.bf16.msra.mxu0 %v718_v14 }
  0x85   : > { %624 = vmatprep.subr.bf16.mxu0 %v719_v15 }
  0x88   : > { %625 = vmatpush3.bf16.msra.mxu0 %v720_v16 }
  0x8b   : > { %398 = vmatmul.mubr.bf16.vlgmr.msra.gmra.mrb[0].mxu0 %v721_v17 }
 0x15e   : > { %v626_v18 = vpop.f32.mrb[0].mxu0 }
 0x15f   : > { %v627_v19 = vpop.f32.mrb[1].mxu0 }
 0x160   : > { %v628_v21 = vadd.f32 %v627_v19, %v626_v18  ;;  %v629_v22 = vpop.f32.mrb[2].mxu0 }
 0x161   : > { %v630_v23 = vpop.f32.mrb[3].mxu0 }
 0x162   : > { %v631_v24 = vadd.f32 %v630_v23, %v629_v22  ;;  %v400_v25 = vadd.f32 %v628_v21, %v572_v20 }
 0x164   : > { %406 = vadd.xlane.f32.xlu0 %v400_v25  ;;  %v403_v26 = vadd.f32 %v631_v24, %v572_v20 }
 0x168   : > { %408 = vadd.xlane.f32.xlu0 %v403_v26 }
 0x1f1   : > { %v407_v27 = vpop.xlane.xlu0 %406 }
 0x1f2   : > { %v410_v28 = vmul.f32 0.0078125, %v407_v27 }
 0x1f4   : > { %v412_v29 = vsub.f32 %v400_v25, %v410_v28 }
 0x1f5   : > { %v409_v30 = vpop.xlane.xlu0 %408 }
 0x1f6   : > { %v411_v31 = vmul.f32 0.0078125, %v409_v30  ;;  %v414_v32 = vmul.f32 %v412_v29, %v412_v29 }
 0x1f8   : > { %v413_v33 = vsub.f32 %v403_v26, %v411_v31  ;;  %416 = vadd.xlane.f32.xlu1 %v414_v32 }
 0x1fa   : > { %v415_v34 = vmul.f32 %v413_v33, %v413_v33 }
 0x1fc   : > { %418 = vadd.xlane.f32.xlu1 %v415_v34 }
 0x285   : > { %v417_v35 = vpop.xlane.xlu1 %416 }
 0x286   : > { %v420_v36 = vmul.f32 0.0078125, %v417_v35 }
 0x288   : > { %v422_v37 = vadd.f32 1e-05, %v420_v36 }
 0x289   : > { %v419_v38 = vpop.xlane.xlu1 %418 }
 0x28a   : > { %724 = vrsqrt.f32 %v422_v37  ;;  %v421_v39 = vmul.f32 0.0078125, %v419_v38 }
 0x28c   : > { %v423_v40 = vadd.f32 1e-05, %v421_v39 }
 0x28e   : > { %726 = vrsqrt.f32 %v423_v40 }
 0x294   : > { %v725_v41 = vpop.eup %724 }
 0x295   : > { %v426_v42 = vmul.f32 %v725_v41, %v412_v29 }
 0x297   : > { %v433_v45 = vmul.f32 %v591_v43, %v426_v42 }
 0x298   : > { %v727_v44 = vpop.eup %726 }
 0x299   : > { %v427_v46 = vmul.f32 %v727_v44, %v413_v33  ;;  %v440_v49 = vadd.f32 %v592_v47, %v433_v45 }
 0x29b   : > { %v434_v48 = vmul.f32 %v591_v43, %v427_v46 }
 0x29d   : > { %v441_v50 = vadd.f32 %v592_v47, %v434_v48 }
 0x29f   : > { %v608_v51 = vpack.c.bf16 %v441_v50, %v440_v49 }
 0x2a1   : > { %609 = vst [vmem:[%s216_s17] sm:$0xff] %v608_v51  }
 0x2a2   : > { %827 = shalt.err (!%p824_p2)
}
 0x2a3   : > { %s828_s10 = scalar_lea.hbm %s1109_s23, 128  ;;  %s832_s22 = scalar_lea.hbm %s1158_s3, 256 }
 0x2a4   : > { %p829_p13 = scmp.ne.s32.totalorder %s1109_s23, %s828_s10  ;;  %p833_p4 = scmp.lt.u32.totalorder %s1109_s23, %s1158_s3 }
 0x2a5   : > { %p834_p5 = scmp.lt.u32.totalorder %s832_s22, %s828_s10  ;;  %p836_p11 = scmp.lt.u32.totalorder %s828_s10, %s1109_s23 }
 0x2a6   : > { %p830_p6 = pnand %p829_p13, %p1172_p0 }
 0x2a7   : > { %p835_p8 = por %p834_p5, %p833_p4 }
 0x2a8   : > { %p831_p10 = pneg %p830_p6 }
 0x2a9   : > { %p837_p1 = por %p836_p11, %p835_p8 }
 0x2ab   : > { %p838_p3 = pnand %p837_p1, %p831_p10 }
 0x2ad   : > { %841 = shalt.err (!%p838_p3)
}
 0x2ae   : > { %s894_s18 = smov 64   ;;  %s895_s20 = smov 4  }
 0x2af   : > { %642 = dma.vmem_to_hbm [thread:$0]  (%p1172_p0), %s1111_s24, 128, %s1109_s23, %s453_s5, %s894_s18, %s894_s18, %s895_s20  }
 0x2b0 PF: > { %s481_s17 = sand.u32 1, %s872_s12   ;;  %p1173_p7 = scmp.ne.s32.totalorder %s1163_s19, 0 }
 0x2b1   : > { %p1174_p9 = scmp.ge.s32.totalorder %s884_s15, 2  ;;  %s482_s26 = scalar_lea.sflag [#allocation4], %s481_s17 }
 0x2b3   : > { %p656_p12 = pnand %p1174_p9, %p1173_p7 }
 0x2b5   : > { %867 = dma.done.wait (!%p656_p12), %s482_s26, 128  }
 0x2b6   : > { %869 = vsyncadd (!%p656_p12), %s482_s26, 4294967168  ;;  %p17_p2 = scmp.ge.s32.totalorder %s1026_s4, 4   ;;  %s1175_s12 = smov %s876_s13 }
 0x2b7   : > { %s1176_s13 = smov %s880_s14  ;;  %s1177_s14 = smov %s1042_s7 }
 0x2b8   : > { %s1178_s15 = smov %s1026_s4  ;;  %19 = sbr.rel (!%p17_p2) target bundleno = 6 (0x6), region = 85 }
 0x2bf   :  { %487 = vsyncpa [#allocation3], 1 }
 0x2c0   :  { %489 = vsyncpa [#allocation3 + $0x1], 1 }
 0x2c1   :  { %490 = vsyncpa [#allocation6], 1 }
 0x2c2   :  { %491 = vsyncpa [#allocation4], 1 }
 0x2c3   :  { %493 = vsyncpa [#allocation4 + $0x1], 1 }

</bundles_post_ra>
